<compile_context>
chip_gen: v5e
topology: v5e:2x2
jax: 0.10.0
libtpu: 0.0.40
codegen_flags: <defaults>
</compile_context>

<pallas_src>
import functools

import jax
import jax.numpy as jnp
from jax import lax
from jax.experimental import pallas as pl
from jax.experimental.pallas import tpu as pltpu


def _round_up(n, m):
    return ((n + m - 1) // m) * m


def _cdiv(a, b):
    return (a + b - 1) // b


def _vmem_capacity_bytes():
    """Trace-time VMEM capacity query with a conservative (v7x) fallback."""
    try:
        info = pltpu.get_tpu_info()
        cap = getattr(info, "vmem_capacity_bytes", None)
        if cap:
            return int(cap)
    except Exception:
        pass
    return 64 * 1024 * 1024


def _vmem_estimate(tb, kc, d, x_bytes, c_bytes):
    # Double-buffered x/labels/out tiles + double-buffered centers chunk and
    # the two (1, KC) rows + scratch accumulator + ~6 live (TB, KC) f32/i32
    # intermediates (cross / partial / mask / masked, with headroom).
    tiles = 2 * (tb * d * x_bytes + tb * 4 + tb * 4)
    chunked = 2 * (kc * d * c_bytes + 2 * kc * 4)
    scratch = tb * 4
    interm = 6 * tb * kc * 4
    return tiles + chunked + scratch + interm


def multi_center_loss_kernel(labels_ref, x_ref, c_ref, half_csq_ref, cid_ref,
                             out_ref, min_acc_ref, *, use_bf16_matmul):
    j = pl.program_id(1)

    @pl.when(j == 0)
    def _init():
        min_acc_ref[...] = jnp.full(min_acc_ref.shape, jnp.inf,
                                    dtype=min_acc_ref.dtype)

    x = x_ref[...]          # (TB, D) native dtype
    c = c_ref[...]          # (KC, D) centers chunk, streamed over grid axis 1

    if use_bf16_matmul and x.dtype == jnp.float32:
        x_mm = x.astype(jnp.bfloat16)
        c_mm = c.astype(jnp.bfloat16)
    else:
        x_mm, c_mm = x, c

    # x . c^T without materializing a transpose of the centers chunk:
    # contract the last dim of both operands (native MXU form).
    cross = lax.dot_general(
        x_mm, c_mm, dimension_numbers=(((1,), (1,)), ((), ())),
        preferred_element_type=jnp.float32)                     # (TB, KC)

    # 0.5*||c||^2 is hoisted (wrapper), so no (TB, KC) multiply is needed here.
    partial = half_csq_ref[...] - cross                         # (TB, KC)

    # Class mask: single compare against the precomputed class-id row
    # (padded centers carry class_id = -1, so they can never be selected).
    mask = cid_ref[...] == labels_ref[...]                      # (TB, KC)
    masked = jnp.where(mask, partial, jnp.inf)
    chunk_min = jnp.min(masked, axis=-1, keepdims=True)         # (TB, 1)
    min_acc_ref[...] = jnp.minimum(min_acc_ref[...], chunk_min)

    @pl.when(j == pl.num_programs(1) - 1)
    def _finalize():
        xf = x.astype(jnp.float32)
        x_sq = jnp.sum(xf * xf, axis=-1, keepdims=True)         # (TB, 1)
        # ||x||^2 is constant along K -> added after the min; fold the 2x
        # back on the tiny (TB, 1) result; clamp at 0 against fp cancellation.
        out_ref[...] = jnp.maximum(2.0 * min_acc_ref[...] + x_sq, 0.0)


def multi_center_loss(x, labels, centers, num_centers_per_class, *,
                      tile_b=None, k_chunk=512, use_bf16_matmul=False):
    """Pallas wrapper. x: (B, D), labels: (B,) int, centers: (K, D) -> scalar f32."""
    B, D = x.shape
    K, _ = centers.shape

    x_bytes = jnp.dtype(x.dtype).itemsize
    c_bytes = jnp.dtype(centers.dtype).itemsize

    vmem_cap = _vmem_capacity_bytes()

    # Chip-aware default batch tile: big tiles on 128 MiB parts (v5e/v6e),
    # conservative on v7x's 64 MiB VMEM.
    if tile_b is None:
        tile_b = 1024 if vmem_cap >= 100 * 1024 * 1024 else 256

    # ---- K (centers) chunking: lane-aligned chunk that divides K_pad. ----
    K_pad = _round_up(K, 128)
    kc_limit = max(128, _round_up(min(k_chunk, K_pad), 128))
    m = K_pad // 128
    KC = 128
    for d in range(1, m + 1):
        if m % d == 0 and 128 * d <= kc_limit:
            KC = 128 * d
    KG = K_pad // KC

    # ---- Batch tile: multiple of 8, give both v7x cores work when possible,
    # then shrink until the working set fits a fraction of VMEM. ----
    TB = _round_up(min(tile_b, B), 8)
    TB = max(8, min(TB, _round_up(_cdiv(B, 2), 8)))
    budget = int(0.55 * vmem_cap)
    while TB > 8 and _vmem_estimate(TB, KC, D, x_bytes, c_bytes) > budget:
        TB = max(8, _round_up(TB // 2, 8))
    est = _vmem_estimate(TB, KC, D, x_bytes, c_bytes)
    vmem_limit = int(min(int(0.9 * vmem_cap),
                         max(32 * 1024 * 1024, 2 * est)))

    B_pad = _round_up(B, TB)
    G = B_pad // TB

    if B_pad != B:
        x = jnp.pad(x, ((0, B_pad - B), (0, 0)))
        labels = jnp.pad(labels, (0, B_pad - B))
    labels_2d = labels.astype(jnp.int32).reshape(B_pad, 1)

    # Hoisted 0.5*||c||^2 and class-id rows (tiny streamed VMEM inputs).
    c_f32 = centers.astype(jnp.float32)
    half_csq = 0.5 * jnp.sum(c_f32 * c_f32, axis=-1)                   # (K,)
    class_id = jnp.arange(K, dtype=jnp.int32) // num_centers_per_class
    if K_pad != K:
        centers = jnp.pad(centers, ((0, K_pad - K), (0, 0)))
        half_csq = jnp.pad(half_csq, (0, K_pad - K))
        class_id = jnp.pad(class_id, (0, K_pad - K), constant_values=-1)
    half_csq = half_csq.reshape(1, K_pad)
    class_id = class_id.reshape(1, K_pad)

    kernel = functools.partial(multi_center_loss_kernel,
                               use_bf16_matmul=use_bf16_matmul)

    # TODO(synk): once single-buffered blocks (pipeline_mode=pl.Buffered(1))
    # are safe to request through the pallas_call TPU pipeline, use them for
    # the batch-invariant x/labels blocks revisited across the K axis.
    min_d = pl.pallas_call(
        kernel,
        out_shape=jax.ShapeDtypeStruct((B_pad, 1), jnp.float32),
        grid_spec=pltpu.PrefetchScalarGridSpec(
            num_scalar_prefetch=0,
            grid=(G, KG),
            in_specs=[
                pl.BlockSpec((TB, 1), lambda i, j: (i, 0)),    # labels tile
                pl.BlockSpec((TB, D), lambda i, j: (i, 0)),    # x tile
                pl.BlockSpec((KC, D), lambda i, j: (j, 0)),    # centers chunk
                pl.BlockSpec((1, KC), lambda i, j: (0, j)),    # 0.5*||c||^2 row
                pl.BlockSpec((1, KC), lambda i, j: (0, j)),    # class-id row
            ],
            out_specs=pl.BlockSpec((TB, 1), lambda i, j: (i, 0)),
            scratch_shapes=[pltpu.VMEM((TB, 1), jnp.float32)],
        ),
        compiler_params=pltpu.CompilerParams(
            dimension_semantics=("parallel", "arbitrary"),
            vmem_limit_bytes=vmem_limit,
        ),
    )(labels_2d, x, centers, half_csq, class_id)

    # Tiny final mean (and drop of batch padding) in plain JAX so the batch
    # grid axis stays embarrassingly parallel (megacore-friendly on v7x).
    return jnp.sum(min_d[:B, 0]) / jnp.float32(B)


def multi_center_loss_ref(x, labels, centers, num_centers_per_class):
    """Pure-JAX reference mirroring the PyTorch per-sample loop semantics."""
    B = x.shape[0]
    total = 0.0
    for i in range(B):
        lbl = int(labels[i])
        start = lbl * num_centers_per_class
        class_centers = centers[start:start + num_centers_per_class]  # (C, D)
        d = jnp.sum((x[i][None, :] - class_centers) ** 2, axis=1)
        total = total + jnp.min(d)
    return total / B


if __name__ == "__main__":
    num_classes = 4
    feat_dim = 32
    num_centers_per_class = 2
    batch = 8

    key = jax.random.PRNGKey(0)
    k_x, k_lbl, k_c = jax.random.split(key, 3)

    # Deterministic "parameter" init (torch.randn-equivalent shape).
    centers = jax.random.normal(
        k_c, (num_classes * num_centers_per_class, feat_dim), dtype=jnp.float32)

    x = jax.random.normal(k_x, (batch, feat_dim), dtype=jnp.float32)
    labels = jax.random.randint(k_lbl, (batch,), 0, num_classes, dtype=jnp.int32)

    loss = multi_center_loss(x, labels, centers, num_centers_per_class)
    loss = jax.block_until_ready(loss)

    ref = multi_center_loss_ref(x, labels, centers, num_centers_per_class)
    assert jnp.allclose(loss, ref, rtol=1e-4, atol=1e-4), (loss, ref)

    print("KERNEL_OK")
</pallas_src>

<mosaic_0001>
module attributes {stable_mosaic.version = 11 : i64} {
  func.func @multi_center_loss_kernel(%arg0: i32, %arg1: i32, %arg2: memref<8x1xi32, #tpu.memory_space<vmem>>, %arg3: memref<8x32xf32, #tpu.memory_space<vmem>>, %arg4: memref<128x32xf32, #tpu.memory_space<vmem>>, %arg5: memref<1x128xf32, #tpu.memory_space<vmem>>, %arg6: memref<1x128xi32, #tpu.memory_space<vmem>>, %arg7: memref<8x1xf32, #tpu.memory_space<vmem>>, %arg8: memref<8x1xf32, #tpu.memory_space<vmem>>) attributes {dimension_semantics = [#tpu.dimension_semantics<parallel>, #tpu.dimension_semantics<arbitrary>], iteration_bounds = array<i64: 1, 1>, scalar_prefetch = 0 : i64, scratch_operands = 1 : i64, tpu.core_type = #tpu.core_type<tc>, window_params = [{transform_indices = @transform_0, window_bounds = array<i64: 8, 1>}, {transform_indices = @transform_1, window_bounds = array<i64: 8, 32>}, {transform_indices = @transform_2, window_bounds = array<i64: 128, 32>}, {transform_indices = @transform_3, window_bounds = array<i64: 1, 128>}, {transform_indices = @transform_4, window_bounds = array<i64: 1, 128>}, {transform_indices = @transform_5, window_bounds = array<i64: 8, 1>}]} {
    %c0_i32 = arith.constant 0 : i32
    %0 = arith.cmpi eq, %arg1, %c0_i32 : i32
    %1 = arith.extui %0 : i1 to i32
    %c0_i32_0 = arith.constant 0 : i32
    %2 = arith.cmpi ne, %1, %c0_i32_0 : i32
    scf.if %2 {
      %cst_18 = arith.constant 0x7F800000 : f32
      %24 = vector.broadcast %cst_18 : f32 to vector<8x1xf32>
      %c0_19 = arith.constant 0 : index
      %c0_20 = arith.constant 0 : index
      %25 = vector.load %arg8[%c0_19, %c0_20] : memref<8x1xf32, #tpu.memory_space<vmem>>, vector<8x1xf32>
      tpu.vector_store %arg8[%c0_19, %c0_20], %24 {strides = array<i32>} : memref<8x1xf32, #tpu.memory_space<vmem>>, vector<8x1xf32>,
    } else {
    }
    %c0 = arith.constant 0 : index
    %c0_1 = arith.constant 0 : index
    %3 = vector.load %arg3[%c0, %c0_1] : memref<8x32xf32, #tpu.memory_space<vmem>>, vector<8x32xf32>
    %c0_2 = arith.constant 0 : index
    %c0_3 = arith.constant 0 : index
    %4 = vector.load %arg4[%c0_2, %c0_3] : memref<128x32xf32, #tpu.memory_space<vmem>>, vector<128x32xf32>
    %cst = arith.constant dense<0.000000e+00> : vector<8x128xf32>
    %5 = tpu.matmul %3, %4, %cst {dimension_numbers = #tpu.dot_dimension_numbers<[1], [1], [0], [0], [0, 0, 1, 0], [], []>} : vector<8x32xf32>, vector<128x32xf32>, vector<8x128xf32> -> vector<8x128xf32>
    %c0_4 = arith.constant 0 : index
    %c0_5 = arith.constant 0 : index
    %6 = vector.load %arg5[%c0_4, %c0_5] : memref<1x128xf32, #tpu.memory_space<vmem>>, vector<1x128xf32>
    %7 = vector.broadcast %6 : vector<1x128xf32> to vector<8x128xf32>
    %8 = arith.subf %7, %5 : vector<8x128xf32>
    %c0_6 = arith.constant 0 : index
    %c0_7 = arith.constant 0 : index
    %9 = vector.load %arg6[%c0_6, %c0_7] : memref<1x128xi32, #tpu.memory_space<vmem>>, vector<1x128xi32>
    %c0_8 = arith.constant 0 : index
    %c0_9 = arith.constant 0 : index
    %10 = vector.load %arg2[%c0_8, %c0_9] : memref<8x1xi32, #tpu.memory_space<vmem>>, vector<8x1xi32>
    %11 = vector.broadcast %9 : vector<1x128xi32> to vector<8x128xi32>
    %12 = vector.broadcast %10 : vector<8x1xi32> to vector<8x128xi32>
    %13 = arith.cmpi eq, %11, %12 : vector<8x128xi32>
    %cst_10 = arith.constant 0x7F800000 : f32
    %14 = vector.broadcast %cst_10 : f32 to vector<8x128xf32>
    %15 = arith.select %13, %8, %14 : vector<8x128xi1>, vector<8x128xf32>
    %cst_11 = arith.constant dense<0x7F800000> : vector<8xf32>
    %16 = vector.multi_reduction <minimumf>, %15, %cst_11 [1] : vector<8x128xf32> to vector<8xf32>
    %17 = vector.shape_cast %16 : vector<8xf32> to vector<8x1xf32>
    %c0_12 = arith.constant 0 : index
    %c0_13 = arith.constant 0 : index
    %18 = vector.load %arg8[%c0_12, %c0_13] : memref<8x1xf32, #tpu.memory_space<vmem>>, vector<8x1xf32>
    %19 = arith.minimumf %18, %17 : vector<8x1xf32>
    %c0_14 = arith.constant 0 : index
    %c0_15 = arith.constant 0 : index
    %20 = vector.load %arg8[%c0_14, %c0_15] : memref<8x1xf32, #tpu.memory_space<vmem>>, vector<8x1xf32>
    tpu.vector_store %arg8[%c0_14, %c0_15], %19 {strides = array<i32>} : memref<8x1xf32, #tpu.memory_space<vmem>>, vector<8x1xf32>,
    %c0_i32_16 = arith.constant 0 : i32
    %21 = arith.cmpi eq, %arg1, %c0_i32_16 : i32
    %22 = arith.extui %21 : i1 to i32
    %c0_i32_17 = arith.constant 0 : i32
    %23 = arith.cmpi ne, %22, %c0_i32_17 : i32
    scf.if %23 {
      %24 = arith.mulf %3, %3 : vector<8x32xf32>
      %cst_18 = arith.constant dense<0.000000e+00> : vector<8xf32>
      %25 = vector.multi_reduction <add>, %24, %cst_18 [1] : vector<8x32xf32> to vector<8xf32>
      %26 = vector.shape_cast %25 : vector<8xf32> to vector<8x1xf32>
      %c0_19 = arith.constant 0 : index
      %c0_20 = arith.constant 0 : index
      %27 = vector.load %arg8[%c0_19, %c0_20] : memref<8x1xf32, #tpu.memory_space<vmem>>, vector<8x1xf32>
      %cst_21 = arith.constant 2.000000e+00 : f32
      %28 = vector.broadcast %cst_21 : f32 to vector<8x1xf32>
      %29 = arith.mulf %28, %27 : vector<8x1xf32>
      %30 = arith.addf %29, %26 : vector<8x1xf32>
      %cst_22 = arith.constant 0.000000e+00 : f32
      %31 = vector.broadcast %cst_22 : f32 to vector<8x1xf32>
      %32 = arith.maximumf %30, %31 : vector<8x1xf32>
      %c0_23 = arith.constant 0 : index
      %c0_24 = arith.constant 0 : index
      %33 = vector.load %arg7[%c0_23, %c0_24] : memref<8x1xf32, #tpu.memory_space<vmem>>, vector<8x1xf32>
      tpu.vector_store %arg7[%c0_23, %c0_24], %32 {strides = array<i32>} : memref<8x1xf32, #tpu.memory_space<vmem>>, vector<8x1xf32>,
    } else {
    }
    return
  }
  func.func @transform_0(%arg0: i32, %arg1: i32) -> (i32, i32) {
    %c0_i32 = arith.constant 0 : i32
    %c0_i32_0 = arith.constant 0 : i32
    return %arg0, %c0_i32 : i32, i32
  }
  func.func @transform_1(%arg0: i32, %arg1: i32) -> (i32, i32) {
    %c0_i32 = arith.constant 0 : i32
    %c0_i32_0 = arith.constant 0 : i32
    return %arg0, %c0_i32 : i32, i32
  }
  func.func @transform_2(%arg0: i32, %arg1: i32) -> (i32, i32) {
    %c0_i32 = arith.constant 0 : i32
    %c0_i32_0 = arith.constant 0 : i32
    return %arg1, %c0_i32 : i32, i32
  }
  func.func @transform_3(%arg0: i32, %arg1: i32) -> (i32, i32) {
    %c0_i32 = arith.constant 0 : i32
    %c0_i32_0 = arith.constant 0 : i32
    return %c0_i32, %arg1 : i32, i32
  }
  func.func @transform_4(%arg0: i32, %arg1: i32) -> (i32, i32) {
    %c0_i32 = arith.constant 0 : i32
    %c0_i32_0 = arith.constant 0 : i32
    return %c0_i32, %arg1 : i32, i32
  }
  func.func @transform_5(%arg0: i32, %arg1: i32) -> (i32, i32) {
    %c0_i32 = arith.constant 0 : i32
    %c0_i32_0 = arith.constant 0 : i32
    return %arg0, %c0_i32 : i32, i32
  }
}

</mosaic_0001>

<bundles_post_ra>
// kernel: tpu_custom_call.1
= control target key start
LH: loop header
LB: loop body
LE: loop exit
PB: predicated region body
PF: predicated region fallthrough
CT: control target
= control target key end

     0   :  { %vm43_vm0 = vcmask 261120   ;;  %v172_v10 = vmov 0   ;;  %vm24_vm1 = vcmask 7168   ;;  %v173_v20 = vmov inf   ;;  %s288_s2 = inlined_call_operand.vmem [shape: f32[128,32], index: 2, kind: input, shape index: {}]   ;;  %s289_s3 = inlined_call_operand.vmem [shape: f32[1,128], index: 3, kind: input, shape index: {}]   ;;  %s290_s0 = inlined_call_operand.vmem [shape: s32[8,1], index: 0, kind: input, shape index: {}]   ;;  %s291_s1 = inlined_call_operand.vmem [shape: f32[8,32], index: 1, kind: input, shape index: {}]   ;;  %s292_s4 = inlined_call_operand.vmem [shape: s32[1,128], index: 4, kind: input, shape index: {}]   ;;  %s293_s5 = inlined_call_operand.vmem [shape: f32[8,1], index: 5, kind: output, shape index: {}]  }
   0x1   :  { %v42_v0 = vld [vmem:[%s288_s2 + $0x78] sm:$0xff]  ;;  %v41_v1 = vld [vmem:[%s288_s2 + $0x70] sm:$0xff]  ;;  %v40_v2 = vld [vmem:[%s288_s2 + $0x68] sm:$0xff]  ;;  %169 = vset.pattern.permute.xlu0 %v172_v10  ;;  %25 = vst.msk [vmem:[#allocation2] sm:$0xff] %vm24_vm1, %v173_v20 }
   0x2   :  { %150 = vmatpush.xpose.msk.msra.mxu0 %vm43_vm0, %v42_v0  ;;  %v39_v3 = vld [vmem:[%s288_s2 + $0x60] sm:$0xff]  ;;  %v38_v4 = vld [vmem:[%s288_s2 + $0x58] sm:$0xff]  ;;  %v37_v5 = vld [vmem:[%s288_s2 + $0x50] sm:$0xff] }
   0x3   :  { %v36_v6 = vld [vmem:[%s288_s2 + $0x48] sm:$0xff]  ;;  %v35_v7 = vld [vmem:[%s288_s2 + $0x40] sm:$0xff]  ;;  %v34_v8 = vld [vmem:[%s288_s2 + $0x38] sm:$0xff] }
   0x4   :  { %v121_v9 = vld [vmem:[%s290_s0] sm:$0xff]  ;;  %v33_v11 = vld [vmem:[%s288_s2 + $0x30] sm:$0xff]  ;;  %v32_v12 = vld [vmem:[%s288_s2 + $0x28] sm:$0xff] }
   0x5   :  { %124 = vperm.xlu0 %169, %v121_v9   ;;  %v31_v13 = vld [vmem:[%s288_s2 + $0x20] sm:$0xff]  ;;  %v30_v14 = vld [vmem:[%s288_s2 + $0x18] sm:$0xff]  ;;  %v29_v15 = vld [vmem:[%s288_s2 + $0x10] sm:$0xff] }
   0x6   :  { %151 = vmatpush.xpose.msk.msra.mxu0 %vm43_vm0, %v41_v1  ;;  %v28_v16 = vld [vmem:[%s288_s2 + $0x8] sm:$0xff]  ;;  %v27_v17 = vld [vmem:[%s288_s2] sm:$0xff] }
   0x7   :  { %v26_v18 = vld [vmem:[%s291_s1] sm:$0xff] }
   0x8   :  { %v137_v19 = vmul.f32 %v26_v18, %v26_v18  ;;  %v171_v22 = vld [vmem:[%s292_s4] ss:$0 sm:$0xff] }
   0x9   :  { %v170_v23 = vld [vmem:[%s289_s3] ss:$0 sm:$0xff] }
   0xa   :  { %152 = vmatpush.xpose.msk.msra.mxu0 %vm43_vm0, %v40_v2  ;;  %v138_v21 = vsel %vm43_vm0, %v137_v19, 0.0  ;;  %v130_v28 = vld [vmem:[#allocation2] sm:$0xff] }
   0xb   :  { %139 = vadd.xlane.f32.xlu1 %v138_v21 }
   0xe   :  { %153 = vmatpush.xpose.msk.msra.mxu0 %vm43_vm0, %v39_v3 }
  0x12   :  { %154 = vmatpush.xpose.msk.msra.mxu0 %vm43_vm0, %v38_v4 }
  0x16   :  { %155 = vmatpush.xpose.msk.msra.mxu0 %vm43_vm0, %v37_v5 }
  0x1a   :  { %156 = vmatpush.xpose.msk.msra.mxu0 %vm43_vm0, %v36_v6 }
  0x1e   :  { %157 = vmatpush.xpose.msk.msra.mxu0 %vm43_vm0, %v35_v7 }
  0x22   :  { %158 = vmatpush.xpose.msk.msra.mxu0 %vm43_vm0, %v34_v8 }
  0x26   :  { %159 = vmatpush.xpose.msk.msra.mxu0 %vm43_vm0, %v33_v11 }
  0x2a   :  { %160 = vmatpush.xpose.msk.msra.mxu0 %vm43_vm0, %v32_v12 }
  0x2e   :  { %161 = vmatpush.xpose.msk.msra.mxu0 %vm43_vm0, %v31_v13 }
  0x32   :  { %162 = vmatpush.xpose.msk.msra.mxu0 %vm43_vm0, %v30_v14 }
  0x36   :  { %163 = vmatpush.xpose.msk.msra.mxu0 %vm43_vm0, %v29_v15 }
  0x3a   :  { %164 = vmatpush.xpose.msk.msra.mxu0 %vm43_vm0, %v28_v16 }
  0x3e   :  { %165 = vmatpush.xpose.msk.msra.mxu0 %vm43_vm0, %v27_v17 }
  0x41   :  { %166 = vmatmul.msk.f32.vlgmr.msra.gmra.mxu0 %vm43_vm0, %v26_v18 }
  0x77   :  { %v125_v24 = vpop.permute.xlu0 %124 }
  0x78   :  { %vm126_vm2 = vcmp.eq.s32.totalorder %v171_v22, %v125_v24 }
  0x7e   :  { %v140_v31 = vpop.xlane.xlu1 %139 }
  0xbe   :  { %v112_v25 = vpop.f32.mrf.mxu0 }
  0xbf   :  { %v119_v26 = vsub.f32 %v170_v23, %v112_v25 }
  0xc1   :  { %v127_v27 = vsel %vm126_vm2, %v119_v26, inf }
  0xc2   :  { %128 = vmin.xlane.f32.xlu0 %v127_v27 }
 0x135   :  { %v129_v29 = vpop.xlane.xlu0 %128 }
 0x136   :  { %v131_v30 = vmin.f32 %v130_v28, %v129_v29 }
 0x138   :  { %133 = vst.msk [vmem:[#allocation2] sm:$0xff] %vm24_vm1, %v131_v30 }
 0x13f   :  { %v141_v32 = vld [vmem:[#allocation2] sm:$0xff] }
 0x140   :  { %v142_v33 = vmul.f32 2.0, %v141_v32 }
 0x142   :  { %v143_v34 = vadd.f32 %v142_v33, %v140_v31 }
 0x144   :  { %v144_v35 = vmax.f32 %v143_v34, 0.0 }
 0x146   :  { %145 = vst.msk [vmem:[%s293_s5] sm:$0xff] %vm24_vm1, %v144_v35 }

</bundles_post_ra>
